<compile_context>
chip_gen: v5e
topology: v5e:2x2
jax: 0.10.0
libtpu: 0.0.40
codegen_flags: <defaults>
</compile_context>

<pallas_src>
import jax
import jax.numpy as jnp
from jax.experimental import pallas as pl
from jax.experimental.pallas import tpu as pltpu


_HEAD_PAD = 128   # fused-head lane width: col 0 = V, cols 1..n_actions = A
_LANE = 128       # TPU lane width
_SUBLANE16 = 16   # native bf16 sublane tile height


def _round_up(a, m):
    return -(-a // m) * m


def _dueling_kernel(x_ref, w1_ref, b1_ref, w2_ref, b2_ref, wh_ref, bh_ref,
                    o_ref):
    # x arrives f32 from HBM; cast to bf16 on the VPU here (hidden under the
    # x-tile DMA) instead of a separate XLA cast pass in the wrapper.
    x = x_ref[...].astype(w1_ref.dtype)
    # fc1 + relu  (bf16 operands, f32 MXU accumulation, f32 bias)
    h1 = jnp.dot(x, w1_ref[...], preferred_element_type=jnp.float32)
    h1 = jnp.maximum(h1 + b1_ref[...], 0.0).astype(w2_ref.dtype)
    # fc2 + relu
    h2 = jnp.dot(h1, w2_ref[...], preferred_element_type=jnp.float32)
    h2 = jnp.maximum(h2 + b2_ref[...], 0.0).astype(wh_ref.dtype)
    # fused dueling heads: one (TB, 128) lane-dense matmul + unmasked store
    o_ref[...] = (jnp.dot(h2, wh_ref[...], preferred_element_type=jnp.float32)
                  + bh_ref[...]).astype(o_ref.dtype)


def dueling_td_forward(state, params, input_dim_len, n_actions,
                       *, max_batch_tile=1024):
    """Mirror of DuelingTDNetwork.forward. Returns (V, A)."""
    w1, b1, w2, b2, wh, bh = params
    single = (state.ndim == input_dim_len)
    x = state.reshape(1, -1) if single else state.reshape(state.shape[0], -1)
    x = x.astype(jnp.float32)   # stays f32 in HBM; cast to bf16 inside kernel

    B, D = x.shape
    H1 = w1.shape[1]
    H2 = w2.shape[1]
    HP = wh.shape[1]            # padded fused-head width (128)

    # --- batch tiling -----------------------------------------------------
    #  * round batch & tile to multiples of 16 (native bf16 (16,128) tile)
    #  * balance tiles so padding waste per tile is < 16 rows
    #  * force >= 2 tiles when the batch allows so both v7x TCs get work
    B16 = _round_up(max(B, 1), _SUBLANE16)
    tile_cap = max(_SUBLANE16, _round_up(int(max_batch_tile), _SUBLANE16))
    n_tiles = -(-B16 // tile_cap)
    if B16 >= 2 * _SUBLANE16:
        n_tiles = max(n_tiles, 2)
    TB = _round_up(-(-B16 // n_tiles), _SUBLANE16)
    B_pad = n_tiles * TB
    if B_pad != B:
        x = jnp.pad(x, ((0, B_pad - B), (0, 0)))

    # Weights/biases: full block pinned to (0, 0) -> fetched once and
    # VMEM-resident across all batch tiles.  (~0.4 MB total here;
    # single-buffering them via pipeline_mode=pl.Buffered(1) only becomes
    # worthwhile if the fc dims grow into the multi-MB range on v7x.)
    resident = lambda shape: pl.BlockSpec(shape, lambda i: (0, 0))

    w_itemsize = jnp.dtype(w1.dtype).itemsize
    flops = 2 * B_pad * (D * H1 + H1 * H2 + H2 * HP)
    bytes_accessed = (B_pad * D * 4                              # x read, f32
                      + (w1.size + w2.size + wh.size) * w_itemsize
                      + (b1.size + b2.size + bh.size) * 4
                      + B_pad * HP * 4)                          # out write

    out = pl.pallas_call(
        _dueling_kernel,
        grid=(n_tiles,),
        in_specs=[
            pl.BlockSpec((TB, D), lambda i: (i, 0)),      # x tile (streamed)
            resident((D, H1)), resident((1, H1)),         # fc1
            resident((H1, H2)), resident((1, H2)),        # fc2
            resident((H2, HP)), resident((1, HP)),        # fused V|A head
        ],
        out_specs=pl.BlockSpec((TB, HP), lambda i: (i, 0)),
        out_shape=jax.ShapeDtypeStruct((B_pad, HP), jnp.float32),
        compiler_params=pltpu.CompilerParams(
            dimension_semantics=("parallel",),
            vmem_limit_bytes=32 * 1024 * 1024),  # headroom for 1024-row tiles
        cost_estimate=pl.CostEstimate(
            flops=int(flops), transcendentals=0,
            bytes_accessed=int(bytes_accessed)),
    )(x, w1, b1, w2, b2, wh, bh)

    v = out[:B, 0:1]
    a = out[:B, 1:1 + n_actions]
    if single:
        # PyTorch unbatched path returns 1-D tensors (1,) / (n_actions,)
        return v[0], a[0]
    return v, a


def init_params(key, total_fc_input_dims, fc1_dims, fc2_dims, n_actions):
    """Deterministic init mimicking nn.Linear's U(-1/sqrt(fan_in), 1/sqrt(fan_in)).
    Weights stored as [in, out] (transposed from PyTorch's [out, in])."""
    def linear(k, fan_in, fan_out):
        kw, kb = jax.random.split(k)
        bound = 1.0 / jnp.sqrt(jnp.float32(fan_in))
        w = jax.random.uniform(kw, (fan_in, fan_out), jnp.float32, -bound, bound)
        b = jax.random.uniform(kb, (1, fan_out), jnp.float32, -bound, bound)
        return w, b

    k1, k2, k3, k4 = jax.random.split(key, 4)
    w1, b1 = linear(k1, total_fc_input_dims, fc1_dims)
    w2, b2 = linear(k2, fc1_dims, fc2_dims)
    wv, bv = linear(k3, fc2_dims, 1)
    wa, ba = linear(k4, fc2_dims, n_actions)
    return (w1, b1, w2, b2, wv, bv, wa, ba)


def prepare_params(raw_params, n_actions, weight_dtype=jnp.bfloat16):
    """One-time packing (outside the forward call):
      * fuse the V and A heads into a single zero-padded lane-dense
        (H2p, 128) weight/bias,
      * zero-pad hidden dims to multiples of 128 so every activation/weight
        tile is lane-dense (relu(0 + 0) = 0 and zero weight rows keep the
        math identical),
      * cast weights to bf16 (biases stay f32; all dots accumulate in f32).
    """
    w1, b1, w2, b2, wv, bv, wa, ba = raw_params
    D, H1 = w1.shape
    H2 = w2.shape[1]
    H1p = _round_up(H1, _LANE)
    H2p = _round_up(H2, _LANE)
    assert 1 + n_actions <= _HEAD_PAD

    w1p = jnp.zeros((D, H1p), jnp.float32).at[:, :H1].set(w1)
    b1p = jnp.zeros((1, H1p), jnp.float32).at[:, :H1].set(b1)
    w2p = jnp.zeros((H1p, H2p), jnp.float32).at[:H1, :H2].set(w2)
    b2p = jnp.zeros((1, H2p), jnp.float32).at[:, :H2].set(b2)
    wh = jnp.zeros((H2p, _HEAD_PAD), jnp.float32)
    wh = wh.at[:H2, 0:1].set(wv).at[:H2, 1:1 + n_actions].set(wa)
    bh = jnp.zeros((1, _HEAD_PAD), jnp.float32)
    bh = bh.at[:, 0:1].set(bv).at[:, 1:1 + n_actions].set(ba)
    return (w1p.astype(weight_dtype), b1p,
            w2p.astype(weight_dtype), b2p,
            wh.astype(weight_dtype), bh)


def _reference_forward(x2d, params, n_actions):
    """Pure-JAX reference with the same bf16/f32 mixed precision as the kernel."""
    w1, b1, w2, b2, wh, bh = params
    xr = x2d.astype(w1.dtype)
    h1 = jnp.maximum(
        jnp.dot(xr, w1, preferred_element_type=jnp.float32) + b1, 0.0
    ).astype(w2.dtype)
    h2 = jnp.maximum(
        jnp.dot(h1, w2, preferred_element_type=jnp.float32) + b2, 0.0
    ).astype(wh.dtype)
    out = jnp.dot(h2, wh, preferred_element_type=jnp.float32) + bh
    return out[:, 0:1], out[:, 1:1 + n_actions]


if __name__ == "__main__":
    key = jax.random.PRNGKey(0)

    # Module configuration (small, consistent with the reference):
    input_dims = (4, 16, 16)           # e.g. image-like observation
    input_dim_len = len(input_dims)
    total_fc_input_dims = 4 * 16 * 16  # 1024
    fc1_dims, fc2_dims = 128, 64       # network_args['fc_dims']
    n_actions = 6
    batch = 2

    kp, kx = jax.random.split(key)
    raw = init_params(kp, total_fc_input_dims, fc1_dims, fc2_dims, n_actions)
    params = prepare_params(raw, n_actions)   # done ONCE, not per forward call

    # --- Batched path: (B, *input_dims) ---
    state = jax.random.normal(kx, (batch,) + input_dims, jnp.float32)
    V, A = dueling_td_forward(state, params, input_dim_len, n_actions)
    V, A = jax.block_until_ready((V, A))
    assert V.shape == (batch, 1) and A.shape == (batch, n_actions)

    V_ref, A_ref = _reference_forward(state.reshape(batch, -1), params, n_actions)
    assert jnp.allclose(V, V_ref, atol=2e-2, rtol=2e-2)
    assert jnp.allclose(A, A_ref, atol=2e-2, rtol=2e-2)

    # --- Unbatched path: state.shape == input_dims ---
    v1, a1 = dueling_td_forward(state[0], params, input_dim_len, n_actions)
    jax.block_until_ready((v1, a1))
    assert v1.shape == (1,) and a1.shape == (n_actions,)
    assert jnp.allclose(v1, V_ref[0], atol=2e-2, rtol=2e-2)
    assert jnp.allclose(a1, A_ref[0], atol=2e-2, rtol=2e-2)

    # --- Explicit multi-tile path (weights VMEM-resident across 3 tiles) ---
    kb = jax.random.PRNGKey(1)
    big = jax.random.normal(kb, (40,) + input_dims, jnp.float32)
    Vb, Ab = dueling_td_forward(big, params, input_dim_len, n_actions,
                                max_batch_tile=16)   # grid = 3 tiles of 16
    Vb, Ab = jax.block_until_ready((Vb, Ab))
    Vb_ref, Ab_ref = _reference_forward(big.reshape(40, -1), params, n_actions)
    assert jnp.allclose(Vb, Vb_ref, atol=2e-2, rtol=2e-2)
    assert jnp.allclose(Ab, Ab_ref, atol=2e-2, rtol=2e-2)

    # --- Default tiling: batch auto-split into >=2 balanced 16-aligned tiles ---
    kc = jax.random.PRNGKey(2)
    med = jax.random.normal(kc, (48,) + input_dims, jnp.float32)
    Vm, Am = dueling_td_forward(med, params, input_dim_len, n_actions)
    Vm, Am = jax.block_until_ready((Vm, Am))
    Vm_ref, Am_ref = _reference_forward(med.reshape(48, -1), params, n_actions)
    assert jnp.allclose(Vm, Vm_ref, atol=2e-2, rtol=2e-2)
    assert jnp.allclose(Am, Am_ref, atol=2e-2, rtol=2e-2)

    print("KERNEL_OK")
</pallas_src>

<mosaic_0001>
module attributes {stable_mosaic.version = 11 : i64} {
  func.func @_dueling_kernel(%arg0: i32, %arg1: memref<16x1024xf32, #tpu.memory_space<vmem>>, %arg2: memref<1024x128xbf16, #tpu.memory_space<vmem>>, %arg3: memref<1x128xf32, #tpu.memory_space<vmem>>, %arg4: memref<128x128xbf16, #tpu.memory_space<vmem>>, %arg5: memref<1x128xf32, #tpu.memory_space<vmem>>, %arg6: memref<128x128xbf16, #tpu.memory_space<vmem>>, %arg7: memref<1x128xf32, #tpu.memory_space<vmem>>, %arg8: memref<16x128xf32, #tpu.memory_space<vmem>>) attributes {dimension_semantics = [#tpu.dimension_semantics<parallel>], iteration_bounds = array<i64: 1>, scalar_prefetch = 0 : i64, scratch_operands = 0 : i64, tpu.core_type = #tpu.core_type<tc>, window_params = [{transform_indices = @transform_0, window_bounds = array<i64: 16, 1024>}, {pipeline_mode = #tpu.pipeline_mode<synchronous>, transform_indices = @transform_1, window_bounds = array<i64: 1024, 128>}, {pipeline_mode = #tpu.pipeline_mode<synchronous>, transform_indices = @transform_2, window_bounds = array<i64: 1, 128>}, {pipeline_mode = #tpu.pipeline_mode<synchronous>, transform_indices = @transform_3, window_bounds = array<i64: 128, 128>}, {pipeline_mode = #tpu.pipeline_mode<synchronous>, transform_indices = @transform_4, window_bounds = array<i64: 1, 128>}, {pipeline_mode = #tpu.pipeline_mode<synchronous>, transform_indices = @transform_5, window_bounds = array<i64: 128, 128>}, {pipeline_mode = #tpu.pipeline_mode<synchronous>, transform_indices = @transform_6, window_bounds = array<i64: 1, 128>}, {transform_indices = @transform_7, window_bounds = array<i64: 16, 128>}]} {
    %c0 = arith.constant 0 : index
    %c0_0 = arith.constant 0 : index
    %0 = vector.load %arg1[%c0, %c0_0] : memref<16x1024xf32, #tpu.memory_space<vmem>>, vector<16x1024xf32>
    %1 = arith.truncf %0 : vector<16x1024xf32> to vector<16x1024xbf16>
    %c0_1 = arith.constant 0 : index
    %c0_2 = arith.constant 0 : index
    %2 = vector.load %arg2[%c0_1, %c0_2] : memref<1024x128xbf16, #tpu.memory_space<vmem>>, vector<1024x128xbf16>
    %cst = arith.constant dense<0.000000e+00> : vector<16x128xf32>
    %3 = tpu.matmul %1, %2, %cst {dimension_numbers = #tpu.dot_dimension_numbers<[1], [0], [0], [1], [0, 0, 1, 1], [], []>} : vector<16x1024xbf16>, vector<1024x128xbf16>, vector<16x128xf32> -> vector<16x128xf32>
    %c0_3 = arith.constant 0 : index
    %c0_4 = arith.constant 0 : index
    %4 = vector.load %arg3[%c0_3, %c0_4] : memref<1x128xf32, #tpu.memory_space<vmem>>, vector<1x128xf32>
    %5 = vector.broadcast %4 : vector<1x128xf32> to vector<16x128xf32>
    %6 = arith.addf %3, %5 : vector<16x128xf32>
    %cst_5 = arith.constant 0.000000e+00 : f32
    %7 = vector.broadcast %cst_5 : f32 to vector<16x128xf32>
    %8 = arith.maximumf %6, %7 : vector<16x128xf32>
    %9 = arith.truncf %8 : vector<16x128xf32> to vector<16x128xbf16>
    %c0_6 = arith.constant 0 : index
    %c0_7 = arith.constant 0 : index
    %10 = vector.load %arg4[%c0_6, %c0_7] : memref<128x128xbf16, #tpu.memory_space<vmem>>, vector<128x128xbf16>
    %cst_8 = arith.constant dense<0.000000e+00> : vector<16x128xf32>
    %11 = tpu.matmul %9, %10, %cst_8 {dimension_numbers = #tpu.dot_dimension_numbers<[1], [0], [0], [1], [0, 0, 1, 1], [], []>} : vector<16x128xbf16>, vector<128x128xbf16>, vector<16x128xf32> -> vector<16x128xf32>
    %c0_9 = arith.constant 0 : index
    %c0_10 = arith.constant 0 : index
    %12 = vector.load %arg5[%c0_9, %c0_10] : memref<1x128xf32, #tpu.memory_space<vmem>>, vector<1x128xf32>
    %13 = vector.broadcast %12 : vector<1x128xf32> to vector<16x128xf32>
    %14 = arith.addf %11, %13 : vector<16x128xf32>
    %cst_11 = arith.constant 0.000000e+00 : f32
    %15 = vector.broadcast %cst_11 : f32 to vector<16x128xf32>
    %16 = arith.maximumf %14, %15 : vector<16x128xf32>
    %17 = arith.truncf %16 : vector<16x128xf32> to vector<16x128xbf16>
    %c0_12 = arith.constant 0 : index
    %c0_13 = arith.constant 0 : index
    %18 = vector.load %arg6[%c0_12, %c0_13] : memref<128x128xbf16, #tpu.memory_space<vmem>>, vector<128x128xbf16>
    %cst_14 = arith.constant dense<0.000000e+00> : vector<16x128xf32>
    %19 = tpu.matmul %17, %18, %cst_14 {dimension_numbers = #tpu.dot_dimension_numbers<[1], [0], [0], [1], [0, 0, 1, 1], [], []>} : vector<16x128xbf16>, vector<128x128xbf16>, vector<16x128xf32> -> vector<16x128xf32>
    %c0_15 = arith.constant 0 : index
    %c0_16 = arith.constant 0 : index
    %20 = vector.load %arg7[%c0_15, %c0_16] : memref<1x128xf32, #tpu.memory_space<vmem>>, vector<1x128xf32>
    %21 = vector.broadcast %20 : vector<1x128xf32> to vector<16x128xf32>
    %22 = arith.addf %19, %21 : vector<16x128xf32>
    %c0_17 = arith.constant 0 : index
    %c0_18 = arith.constant 0 : index
    %23 = vector.load %arg8[%c0_17, %c0_18] : memref<16x128xf32, #tpu.memory_space<vmem>>, vector<16x128xf32>
    tpu.vector_store %arg8[%c0_17, %c0_18], %22 {strides = array<i32>} : memref<16x128xf32, #tpu.memory_space<vmem>>, vector<16x128xf32>,
    return
  }
  func.func @transform_0(%arg0: i32) -> (i32, i32) {
    %c0_i32 = arith.constant 0 : i32
    %c0_i32_0 = arith.constant 0 : i32
    return %arg0, %c0_i32 : i32, i32
  }
  func.func @transform_1(%arg0: i32) -> (i32, i32) {
    %c0_i32 = arith.constant 0 : i32
    %c0_i32_0 = arith.constant 0 : i32
    %c0_i32_1 = arith.constant 0 : i32
    return %c0_i32, %c0_i32_0 : i32, i32
  }
  func.func @transform_2(%arg0: i32) -> (i32, i32) {
    %c0_i32 = arith.constant 0 : i32
    %c0_i32_0 = arith.constant 0 : i32
    %c0_i32_1 = arith.constant 0 : i32
    return %c0_i32, %c0_i32_0 : i32, i32
  }
  func.func @transform_3(%arg0: i32) -> (i32, i32) {
    %c0_i32 = arith.constant 0 : i32
    %c0_i32_0 = arith.constant 0 : i32
    %c0_i32_1 = arith.constant 0 : i32
    return %c0_i32, %c0_i32_0 : i32, i32
  }
  func.func @transform_4(%arg0: i32) -> (i32, i32) {
    %c0_i32 = arith.constant 0 : i32
    %c0_i32_0 = arith.constant 0 : i32
    %c0_i32_1 = arith.constant 0 : i32
    return %c0_i32, %c0_i32_0 : i32, i32
  }
  func.func @transform_5(%arg0: i32) -> (i32, i32) {
    %c0_i32 = arith.constant 0 : i32
    %c0_i32_0 = arith.constant 0 : i32
    %c0_i32_1 = arith.constant 0 : i32
    return %c0_i32, %c0_i32_0 : i32, i32
  }
  func.func @transform_6(%arg0: i32) -> (i32, i32) {
    %c0_i32 = arith.constant 0 : i32
    %c0_i32_0 = arith.constant 0 : i32
    %c0_i32_1 = arith.constant 0 : i32
    return %c0_i32, %c0_i32_0 : i32, i32
  }
  func.func @transform_7(%arg0: i32) -> (i32, i32) {
    %c0_i32 = arith.constant 0 : i32
    %c0_i32_0 = arith.constant 0 : i32
    return %arg0, %c0_i32 : i32, i32
  }
}

</mosaic_0001>

<bundles_post_ra>
// kernel: tpu_custom_call.1
= control target key start
LH: loop header
LB: loop body
LE: loop exit
PB: predicated region body
PF: predicated region fallthrough
CT: control target
= control target key end

     0   :  { %12 = vsyncpa [#allocation3], 0  ;;  %s1550_s0 = inlined_call_operand.hbm [shape: f32[16,1024], index: 0, kind: input, shape index: {}]   ;;  %s1551_s1 = inlined_call_operand.hbm [shape: bf16[1024,128], index: 1, kind: input, shape index: {}]   ;;  %s1552_s2 = inlined_call_operand.vmem [shape: f32[1,128], index: 2, kind: input, shape index: {}]   ;;  %s1553_s3 = inlined_call_operand.hbm [shape: bf16[128,128], index: 3, kind: input, shape index: {}]   ;;  %s1554_s4 = inlined_call_operand.vmem [shape: f32[1,128], index: 4, kind: input, shape index: {}]   ;;  %s1555_s5 = inlined_call_operand.hbm [shape: bf16[128,128], index: 5, kind: input, shape index: {}]   ;;  %s1556_s6 = inlined_call_operand.vmem [shape: f32[1,128], index: 6, kind: input, shape index: {}]   ;;  %s1557_s7 = inlined_call_operand.hbm [shape: f32[16,128], index: 7, kind: output, shape index: {}]  }
   0x1   :  { %13 = vsyncpa [#allocation6], 0 }
   0x2   :  { %14 = vsyncpa [#allocation9], 0  ;;  %s33_s26 = sshll.u32 %s1551_s1, 4  ;;  %s34_s26 = int_to_ptr.hbm [resolvable:$true] %s33_s26 }
   0x3   :  { %15 = vsyncpa [#allocation4], 0  ;;  %s1476_s27 = smov [#allocation5]   ;;  %s20_s8 = sshll.u32 %s1550_s0, 4  ;;  %s21_s8 = int_to_ptr.hbm [resolvable:$true] %s20_s8 }
   0x4   :  { %s35_s28 = sshll.u32 %s1476_s27, 4  ;;  %s1477_s9 = smov 64   ;;  %s36_s28 = int_to_ptr.vmem [resolvable:$true] %s35_s28 }
   0x5   :  { %s1478_s10 = smov 4   ;;  %s1479_s11 = smov [#allocation2]  }
   0x6   :  { %41 = dma.hbm_to_vmem [thread:$0]  %s34_s26, 8192, %s36_s28, [#allocation6], %s1477_s9, %s1477_s9, %s1478_s10  }
   0x7   :  { %s22_s12 = sshll.u32 %s1479_s11, 4  ;;  %s48_s1 = sshll.u32 %s1553_s3, 4  ;;  %s23_s12 = int_to_ptr.vmem [resolvable:$true] %s22_s12  ;;  %s49_s1 = int_to_ptr.hbm [resolvable:$true] %s48_s1 }
   0x8   :  { %s1480_s15 = smov 1024   ;;  %s1481_s16 = smov [#allocation7]  }
   0x9   :  { %28 = dma.hbm_to_vmem [thread:$0]  %s21_s8, 2048, %s23_s12, [#allocation3], %s1480_s15, %s1480_s15, %s1477_s9  }
   0xa   :  { %s50_s17 = sshll.u32 %s1481_s16, 4  ;;  %s63_s0 = sshll.u32 %s1555_s5, 4  ;;  %s51_s17 = int_to_ptr.vmem [resolvable:$true] %s50_s17  ;;  %s64_s0 = int_to_ptr.hbm [resolvable:$true] %s63_s0 }
   0xb   :  { %56 = dma.hbm_to_vmem [thread:$0]  %s49_s1, 1024, %s51_s17, [#allocation6], %s1477_s9, %s1477_s9, %s1478_s10  }
   0xc   :  { %s1482_s20 = smov [#allocation8]  }
   0xd   :  { %s65_s21 = sshll.u32 %s1482_s20, 4  ;;  %s66_s21 = int_to_ptr.vmem [resolvable:$true] %s65_s21 }
   0xe   :  { %71 = dma.hbm_to_vmem [thread:$0]  %s64_s0, 1024, %s66_s21, [#allocation9], %s1477_s9, %s1477_s9, %s1478_s10  }
   0xf   :  { %1468 = dma.done.wait [#allocation3], 2048  }
  0x10   :  { %1469 = vsyncadd [#allocation3], 4294965248 }
  0x11   :  { %1470 = dma.done.wait [#allocation6], 9216  }
  0x12   :  { %1471 = vsyncadd [#allocation6], 4294958080 }
  0x13   :  { %1472 = dma.done.wait [#allocation9], 1024  }
  0x14   :  { %1473 = vsyncadd [#allocation9], 4294966272  ;;  %v1262_v0 = vld [vmem:[#allocation5 + $0x38] sm:$0xff]  ;;  %v1261_v4 = vld [vmem:[#allocation5 + $0x30] sm:$0xff]  ;;  %s1483_s25 = smov [#allocation10]   ;;  %s1484_s29 = smov 128  }
  0x15   :  { %v1270_v1 = vld [vmem:[#allocation5 + $0x78] sm:$0xff]  ;;  %630 = vmatpush.bf16.msra.mxu0 %v1262_v0  ;;  %v1269_v5 = vld [vmem:[#allocation5 + $0x70] sm:$0xff]  ;;  %v1260_v8 = vld [vmem:[#allocation5 + $0x28] sm:$0xff]  ;;  %s918_s26 = sshll.u32 %s1483_s25, 4  ;;  %s1485_s30 = smov 8   ;;  %s919_s26 = int_to_ptr.vmem [resolvable:$true] %s918_s26 }
  0x16   :  { %v1278_v2 = vld [vmem:[#allocation5 + $0xb8] sm:$0xff]  ;;  %644 = vmatpush.bf16.msra.mxu1 %v1270_v1  ;;  %v1277_v6 = vld [vmem:[#allocation5 + $0xb0] sm:$0xff]  ;;  %v1268_v9 = vld [vmem:[#allocation5 + $0x68] sm:$0xff] }
  0x17   :  { %v1286_v3 = vld [vmem:[#allocation5 + $0xf8] sm:$0xff]  ;;  %658 = vmatpush.bf16.msra.mxu2 %v1278_v2  ;;  %v1285_v7 = vld [vmem:[#allocation5 + $0xf0] sm:$0xff]  ;;  %v1276_v10 = vld [vmem:[#allocation5 + $0xa8] sm:$0xff] }
  0x18   :  { %672 = vmatpush.bf16.msra.mxu3 %v1286_v3  ;;  %v1284_v11 = vld [vmem:[#allocation5 + $0xe8] sm:$0xff]  ;;  %v1259_v12 = vld [vmem:[#allocation5 + $0x20] sm:$0xff]  ;;  %v1258_v16 = vld [vmem:[#allocation5 + $0x18] sm:$0xff] }
  0x19   :  { %631 = vmatpush.bf16.msra.mxu0 %v1261_v4  ;;  %v1267_v13 = vld [vmem:[#allocation5 + $0x60] sm:$0xff]  ;;  %v1266_v17 = vld [vmem:[#allocation5 + $0x58] sm:$0xff]  ;;  %v1257_v20 = vld [vmem:[#allocation5 + $0x10] sm:$0xff] }
  0x1a   :  { %645 = vmatpush.bf16.msra.mxu1 %v1269_v5  ;;  %v1275_v14 = vld [vmem:[#allocation5 + $0xa0] sm:$0xff]  ;;  %v1274_v18 = vld [vmem:[#allocation5 + $0x98] sm:$0xff]  ;;  %v1265_v21 = vld [vmem:[#allocation5 + $0x50] sm:$0xff] }
  0x1b   :  { %659 = vmatpush.bf16.msra.mxu2 %v1277_v6  ;;  %v1283_v15 = vld [vmem:[#allocation5 + $0xe0] sm:$0xff]  ;;  %v1282_v19 = vld [vmem:[#allocation5 + $0xd8] sm:$0xff]  ;;  %v1273_v22 = vld [vmem:[#allocation5 + $0x90] sm:$0xff] }
  0x1c   :  { %673 = vmatpush.bf16.msra.mxu3 %v1285_v7  ;;  %v1281_v23 = vld [vmem:[#allocation5 + $0xd0] sm:$0xff]  ;;  %v1256_v24 = vld [vmem:[#allocation5 + $0x8] sm:$0xff]  ;;  %v1255_v28 = vld [vmem:[#allocation5] sm:$0xff] }
  0x1d   :  { %632 = vmatpush.bf16.msra.mxu0 %v1260_v8  ;;  %v1264_v25 = vld [vmem:[#allocation5 + $0x48] sm:$0xff]  ;;  %v1263_v29 = vld [vmem:[#allocation5 + $0x40] sm:$0xff]  ;;  %v1294_v32 = vld [vmem:[#allocation5 + $0x138] sm:$0xff] }
  0x1e   :  { %646 = vmatpush.bf16.msra.mxu1 %v1268_v9  ;;  %v1272_v26 = vld [vmem:[#allocation5 + $0x88] sm:$0xff]  ;;  %v1271_v30 = vld [vmem:[#allocation5 + $0x80] sm:$0xff]  ;;  %v1302_v33 = vld [vmem:[#allocation5 + $0x178] sm:$0xff] }
  0x1f   :  { %660 = vmatpush.bf16.msra.mxu2 %v1276_v10  ;;  %v1280_v27 = vld [vmem:[#allocation5 + $0xc8] sm:$0xff]  ;;  %v1279_v31 = vld [vmem:[#allocation5 + $0xc0] sm:$0xff]  ;;  %v92_v34 = vld [vmem:[#allocation2 + $0x10] sm:$0xff] }
  0x20   :  { %674 = vmatpush.bf16.msra.mxu3 %v1284_v11  ;;  %v100_v35 = vld [vmem:[#allocation2 + $0x50] sm:$0xff]  ;;  %v90_v36 = vld [vmem:[#allocation2] sm:$0xff]  ;;  %v93_v38 = vld [vmem:[#allocation2 + $0x18] sm:$0xff] }
  0x21   :  { %633 = vmatpush.bf16.msra.mxu0 %v1259_v12  ;;  %v98_v37 = vld [vmem:[#allocation2 + $0x40] sm:$0xff]  ;;  %v101_v39 = vld [vmem:[#allocation2 + $0x58] sm:$0xff]  ;;  %v91_v40 = vld [vmem:[#allocation2 + $0x8] sm:$0xff]  ;;  %v108_v44 = vpack.c.bf16 %v100_v35, %v92_v34 }
  0x22   :  { %647 = vmatpush.bf16.msra.mxu1 %v1267_v13  ;;  %v99_v41 = vld [vmem:[#allocation2 + $0x48] sm:$0xff]  ;;  %v1310_v42 = vld [vmem:[#allocation5 + $0x1b8] sm:$0xff]  ;;  %v106_v45 = vpack.c.bf16 %v98_v37, %v90_v36  ;;  %v109_v46 = vpack.c.bf16 %v101_v39, %v93_v38  ;;  %v1293_v48 = vld [vmem:[#allocation5 + $0x130] sm:$0xff] }
  0x23   :  { %661 = vmatpush.bf16.msra.mxu2 %v1275_v14  ;;  %v1318_v43 = vld [vmem:[#allocation5 + $0x1f8] sm:$0xff]  ;;  %v107_v47 = vpack.c.bf16 %v99_v41, %v91_v40  ;;  %v1301_v49 = vld [vmem:[#allocation5 + $0x170] sm:$0xff]  ;;  %v1292_v52 = vld [vmem:[#allocation5 + $0x128] sm:$0xff] }
  0x24   :  { %675 = vmatpush.bf16.msra.mxu3 %v1283_v15  ;;  %v1309_v50 = vld [vmem:[#allocation5 + $0x1b0] sm:$0xff]  ;;  %v1300_v53 = vld [vmem:[#allocation5 + $0x168] sm:$0xff]  ;;  %v1291_v56 = vld [vmem:[#allocation5 + $0x120] sm:$0xff] }
  0x25   :  { %634 = vmatpush.bf16.msra.mxu0 %v1258_v16  ;;  %v1317_v51 = vld [vmem:[#allocation5 + $0x1f0] sm:$0xff]  ;;  %v1308_v54 = vld [vmem:[#allocation5 + $0x1a8] sm:$0xff]  ;;  %v1299_v57 = vld [vmem:[#allocation5 + $0x160] sm:$0xff] }
  0x26   :  { %648 = vmatpush.bf16.msra.mxu1 %v1266_v17  ;;  %v1316_v55 = vld [vmem:[#allocation5 + $0x1e8] sm:$0xff]  ;;  %v1307_v58 = vld [vmem:[#allocation5 + $0x1a0] sm:$0xff]  ;;  %v1290_v60 = vld [vmem:[#allocation5 + $0x118] sm:$0xff] }
  0x27   :  { %662 = vmatpush.bf16.msra.mxu2 %v1274_v18  ;;  %v1315_v59 = vld [vmem:[#allocation5 + $0x1e0] sm:$0xff]  ;;  %v1298_v61 = vld [vmem:[#allocation5 + $0x158] sm:$0xff]  ;;  %v1289_v0 = vld [vmem:[#allocation5 + $0x110] sm:$0xff] }
  0x28   :  { %676 = vmatpush.bf16.msra.mxu3 %v1282_v19  ;;  %v1306_v62 = vld [vmem:[#allocation5 + $0x198] sm:$0xff]  ;;  %v1297_v1 = vld [vmem:[#allocation5 + $0x150] sm:$0xff]  ;;  %v1288_v4 = vld [vmem:[#allocation5 + $0x108] sm:$0xff] }
  0x29   :  { %635 = vmatpush.bf16.msra.mxu0 %v1257_v20  ;;  %v1314_v63 = vld [vmem:[#allocation5 + $0x1d8] sm:$0xff]  ;;  %v1305_v2 = vld [vmem:[#allocation5 + $0x190] sm:$0xff]  ;;  %v1296_v5 = vld [vmem:[#allocation5 + $0x148] sm:$0xff] }
  0x2a   :  { %649 = vmatpush.bf16.msra.mxu1 %v1265_v21  ;;  %v1313_v3 = vld [vmem:[#allocation5 + $0x1d0] sm:$0xff]  ;;  %v1304_v6 = vld [vmem:[#allocation5 + $0x188] sm:$0xff]  ;;  %v1287_v8 = vld [vmem:[#allocation5 + $0x100] sm:$0xff] }
  0x2b   :  { %663 = vmatpush.bf16.msra.mxu2 %v1273_v22  ;;  %v1312_v7 = vld [vmem:[#allocation5 + $0x1c8] sm:$0xff]  ;;  %v1295_v9 = vld [vmem:[#allocation5 + $0x140] sm:$0xff]  ;;  %v96_v16 = vld [vmem:[#allocation2 + $0x30] sm:$0xff] }
  0x2c   :  { %677 = vmatpush.bf16.msra.mxu3 %v1281_v23  ;;  %v1303_v10 = vld [vmem:[#allocation5 + $0x180] sm:$0xff]  ;;  %v95_v14 = vld [vmem:[#allocation2 + $0x28] sm:$0xff]  ;;  %v104_v17 = vld [vmem:[#allocation2 + $0x70] sm:$0xff] }
  0x2d   :  { %636 = vmatpush.bf16.msra.mxu0 %v1256_v24  ;;  %v1311_v11 = vld [vmem:[#allocation5 + $0x1c0] sm:$0xff]  ;;  %v103_v15 = vld [vmem:[#allocation2 + $0x68] sm:$0xff]  ;;  %v97_v18 = vld [vmem:[#allocation2 + $0x38] sm:$0xff]  ;;  %v112_v22 = vpack.c.bf16 %v104_v17, %v96_v16 }
  0x2e   :  { %650 = vmatpush.bf16.msra.mxu1 %v1264_v25  ;;  %v94_v12 = vld [vmem:[#allocation2 + $0x20] sm:$0xff]  ;;  %v105_v19 = vld [vmem:[#allocation2 + $0x78] sm:$0xff]  ;;  %v111_v21 = vpack.c.bf16 %v103_v15, %v95_v14  ;;  %v1325_v25 = vld [vmem:[#allocation7 + $0x30] sm:$0xff] }
  0x2f   :  { %664 = vmatpush.bf16.msra.mxu2 %v1272_v26  ;;  %v102_v13 = vld [vmem:[#allocation2 + $0x60] sm:$0xff]  ;;  %v113_v23 = vpack.c.bf16 %v105_v19, %v97_v18  ;;  %v1326_v24 = vld [vmem:[#allocation7 + $0x38] sm:$0xff]  ;;  %v1324_v26 = vld [vmem:[#allocation7 + $0x28] sm:$0xff] }
  0x30   :  { %678 = vmatpush.bf16.msra.mxu3 %v1280_v27  ;;  %v110_v20 = vpack.c.bf16 %v102_v13, %v94_v12  ;;  %v1323_v27 = vld [vmem:[#allocation7 + $0x20] sm:$0xff]  ;;  %v1334_v39 = vld [vmem:[#allocation8 + $0x38] sm:$0xff]  ;;  %v1333_v40 = vld [vmem:[#allocation8 + $0x30] sm:$0xff] }
  0x31   :  { %637 = vmatpush.bf16.msra.mxu0 %v1255_v28  ;;  %v1322_v28 = vld [vmem:[#allocation7 + $0x18] sm:$0xff]  ;;  %v1345_v34 = vld [vmem:[%s1552_s2] ss:$0 sm:$0xff] }
  0x32   :  { %651 = vmatpush.bf16.msra.mxu1 %v1263_v29  ;;  %v1321_v29 = vld [vmem:[#allocation7 + $0x10] sm:$0xff]  ;;  %v1346_v13 = vld [vmem:[%s1554_s4] ss:$0 sm:$0xff]  ;;  %s920_s4 = sshll.u32 %s1557_s7, 4  ;;  %s921_s4 = int_to_ptr.hbm [resolvable:$true] %s920_s4 }
  0x33   :  { %665 = vmatpush.bf16.msra.mxu2 %v1271_v30 }
  0x34   :  { %679 = vmatpush.bf16.msra.mxu3 %v1279_v31  ;;  %638 = vmatmul.bf16.vlgmr.msra.gmra.mxu0 %v106_v45  ;;  %v1320_v31 = vld [vmem:[#allocation7 + $0x8] sm:$0xff] }
  0x35   :  { %686 = vmatpush.bf16.msrb.mxu0 %v1294_v32  ;;  %652 = vmatmul.bf16.vlgmr.msra.gmra.mxu1 %v107_v47 }
  0x36   :  { %700 = vmatpush.bf16.msrb.mxu1 %v1302_v33  ;;  %666 = vmatmul.bf16.vlgmr.msra.gmra.mxu2 %v108_v44  ;;  %v1319_v33 = vld [vmem:[#allocation7] sm:$0xff]  ;;  %v1332_v44 = vld [vmem:[#allocation8 + $0x28] sm:$0xff] }
  0x37   :  { %714 = vmatpush.bf16.msrb.mxu2 %v1310_v42  ;;  %680 = vmatmul.bf16.vlgmr.msra.gmra.mxu3 %v109_v46 }
  0x38   :  { %728 = vmatpush.bf16.msrb.mxu3 %v1318_v43 }
  0x39   :  { %687 = vmatpush.bf16.msrb.mxu0 %v1293_v48 }
  0x3a   :  { %701 = vmatpush.bf16.msrb.mxu1 %v1301_v49 }
  0x3b   :  { %715 = vmatpush.bf16.msrb.mxu2 %v1309_v50  ;;  %v1331_v50 = vld [vmem:[#allocation8 + $0x20] sm:$0xff] }
  0x3c   :  { %729 = vmatpush.bf16.msrb.mxu3 %v1317_v51 }
  0x3d   :  { %688 = vmatpush.bf16.msrb.mxu0 %v1292_v52 }
  0x3e   :  { %702 = vmatpush.bf16.msrb.mxu1 %v1300_v53 }
  0x3f   :  { %716 = vmatpush.bf16.msrb.mxu2 %v1308_v54 }
  0x40   :  { %730 = vmatpush.bf16.msrb.mxu3 %v1316_v55 }
  0x41   :  { %689 = vmatpush.bf16.msrb.mxu0 %v1291_v56 }
  0x42   :  { %703 = vmatpush.bf16.msrb.mxu1 %v1299_v57 }
  0x43   :  { %717 = vmatpush.bf16.msrb.mxu2 %v1307_v58 }
  0x44   :  { %731 = vmatpush.bf16.msrb.mxu3 %v1315_v59 }
  0x45   :  { %690 = vmatpush.bf16.msrb.mxu0 %v1290_v60 }
  0x46   :  { %704 = vmatpush.bf16.msrb.mxu1 %v1298_v61 }
  0x47   :  { %718 = vmatpush.bf16.msrb.mxu2 %v1306_v62 }
  0x48   :  { %732 = vmatpush.bf16.msrb.mxu3 %v1314_v63 }
  0x49   :  { %691 = vmatpush.bf16.msrb.mxu0 %v1289_v0 }
  0x4a   :  { %705 = vmatpush.bf16.msrb.mxu1 %v1297_v1 }
  0x4b   :  { %719 = vmatpush.bf16.msrb.mxu2 %v1305_v2 }
  0x4c   :  { %733 = vmatpush.bf16.msrb.mxu3 %v1313_v3 }
  0x4d   :  { %692 = vmatpush.bf16.msrb.mxu0 %v1288_v4 }
  0x4e   :  { %706 = vmatpush.bf16.msrb.mxu1 %v1296_v5 }
  0x4f   :  { %720 = vmatpush.bf16.msrb.mxu2 %v1304_v6 }
  0x50   :  { %734 = vmatpush.bf16.msrb.mxu3 %v1312_v7 }
  0x51   :  { %693 = vmatpush.bf16.msrb.mxu0 %v1287_v8  ;;  %v1330_v8 = vld [vmem:[#allocation8 + $0x18] sm:$0xff] }
  0x52   :  { %707 = vmatpush.bf16.msrb.mxu1 %v1295_v9  ;;  %v1329_v9 = vld [vmem:[#allocation8 + $0x10] sm:$0xff] }
  0x53   :  { %721 = vmatpush.bf16.msrb.mxu2 %v1303_v10  ;;  %v1328_v10 = vld [vmem:[#allocation8 + $0x8] sm:$0xff] }
  0x54   :  { %735 = vmatpush.bf16.msrb.mxu3 %v1311_v11  ;;  %694 = vmatmul.bf16.vlgmr.msrb.gmra.mxu0 %v110_v20  ;;  %v1327_v11 = vld [vmem:[#allocation8] sm:$0xff] }
  0x55   :  { %708 = vmatmul.bf16.vlgmr.msrb.gmra.mxu1 %v111_v21  ;;  %813 = vmatpush.bf16.msra.mxu0 %v1326_v24  ;;  %v1347_v20 = vld [vmem:[%s1556_s6] ss:$0 sm:$0xff] }
  0x56   :  { %722 = vmatmul.bf16.vlgmr.msrb.gmra.mxu2 %v112_v22  ;;  %898 = vmatpush.bf16.msra.mxu1 %v1334_v39 }
  0x57   :  { %736 = vmatmul.bf16.vlgmr.msrb.gmra.mxu3 %v113_v23 }
  0x59   :  { %814 = vmatpush.bf16.msra.mxu0 %v1325_v25 }
  0x5a   :  { %899 = vmatpush.bf16.msra.mxu1 %v1333_v40 }
  0x5d   :  { %815 = vmatpush.bf16.msra.mxu0 %v1324_v26 }
  0x5e   :  { %900 = vmatpush.bf16.msra.mxu1 %v1332_v44 }
  0x61   :  { %816 = vmatpush.bf16.msra.mxu0 %v1323_v27 }
  0x62   :  { %901 = vmatpush.bf16.msra.mxu1 %v1331_v50 }
  0x65   :  { %817 = vmatpush.bf16.msra.mxu0 %v1322_v28 }
  0x66   :  { %902 = vmatpush.bf16.msra.mxu1 %v1330_v8 }
  0x69   :  { %818 = vmatpush.bf16.msra.mxu0 %v1321_v29 }
  0x6a   :  { %903 = vmatpush.bf16.msra.mxu1 %v1329_v9 }
  0x6d   :  { %819 = vmatpush.bf16.msra.mxu0 %v1320_v31 }
  0x6e   :  { %904 = vmatpush.bf16.msra.mxu1 %v1328_v10 }
  0x71   :  { %820 = vmatpush.bf16.msra.mxu0 %v1319_v33 }
  0x72   :  { %905 = vmatpush.bf16.msra.mxu1 %v1327_v11 }
  0xb1   :  { %v639_v30 = vpop.f32.mrf.mxu0 }
  0xb2   :  { %v653_v32 = vpop.f32.mrf.mxu1  ;;  %v640_v37 = vadd.f32 %v1345_v34, %v639_v30 }
  0xb4   :  { %v654_v42 = vadd.f32 %v653_v32, %v640_v37 }
  0xb9   :  { %v667_v35 = vpop.f32.mrf.mxu2  ;;  %v641_v38 = vpop.f32.mrf.mxu0 }
  0xba   :  { %v681_v36 = vpop.f32.mrf.mxu3  ;;  %v655_v41 = vpop.f32.mrf.mxu1  ;;  %v642_v43 = vadd.f32 %v1345_v34, %v641_v38  ;;  %v668_v47 = vadd.f32 %v667_v35, %v654_v42 }
  0xbc   :  { %v656_v48 = vadd.f32 %v655_v41, %v642_v43  ;;  %v682_v52 = vadd.f32 %v681_v36, %v668_v47 }
  0xc1   :  { %v669_v45 = vpop.f32.mrf.mxu2 }
  0xc2   :  { %v683_v46 = vpop.f32.mrf.mxu3  ;;  %v670_v53 = vadd.f32 %v669_v45, %v656_v48 }
  0xc4   :  { %v684_v57 = vadd.f32 %v683_v46, %v670_v53 }
  0xd1   :  { %v695_v49 = vpop.f32.mrf.mxu0 }
  0xd2   :  { %v709_v51 = vpop.f32.mrf.mxu1  ;;  %v696_v54 = vadd.f32 %v695_v49, %v682_v52 }
  0xd4   :  { %v710_v59 = vadd.f32 %v709_v51, %v696_v54 }
  0xd9   :  { %v723_v55 = vpop.f32.mrf.mxu2  ;;  %v697_v58 = vpop.f32.mrf.mxu0 }
  0xda   :  { %v737_v56 = vpop.f32.mrf.mxu3  ;;  %v698_v60 = vadd.f32 %v697_v58, %v684_v57  ;;  %v724_v61 = vadd.f32 %v723_v55, %v710_v59  ;;  %v711_v62 = vpop.f32.mrf.mxu1 }
  0xdc   :  { %v712_v63 = vadd.f32 %v711_v62, %v698_v60  ;;  %v738_v1 = vadd.f32 %v737_v56, %v724_v61 }
  0xde   :  { %v742_v5 = vmax.f32 %v738_v1, 0.0 }
  0xe1   :  { %v725_v0 = vpop.f32.mrf.mxu2 }
  0xe2   :  { %v726_v2 = vadd.f32 %v725_v0, %v712_v63  ;;  %v739_v3 = vpop.f32.mrf.mxu3 }
  0xe4   :  { %v740_v4 = vadd.f32 %v739_v3, %v726_v2 }
  0xe6   :  { %v743_v6 = vmax.f32 %v740_v4, 0.0 }
  0xe8   :  { %v744_v7 = vpack.c.bf16 %v743_v6, %v742_v5 }
  0xea   :  { %821 = vmatmul.bf16.vlgmr.msra.gmra.mxu0 %v744_v7 }
 0x167   :  { %v822_v12 = vpop.f32.mrf.mxu0 }
 0x168   :  { %v823_v14 = vadd.f32 %v1346_v13, %v822_v12 }
 0x16a   :  { %v827_v17 = vmax.f32 %v823_v14, 0.0 }
 0x16f   :  { %v824_v15 = vpop.f32.mrf.mxu0 }
 0x170   :  { %v825_v16 = vadd.f32 %v1346_v13, %v824_v15 }
 0x172   :  { %v828_v18 = vmax.f32 %v825_v16, 0.0 }
 0x174   :  { %v829_v19 = vpack.c.bf16 %v828_v18, %v827_v17 }
 0x176   :  { %906 = vmatmul.bf16.vlgmr.msra.gmra.mxu1 %v829_v19 }
 0x1f3   :  { %v907_v21 = vpop.f32.mrf.mxu1 }
 0x1f4   :  { %v908_v22 = vadd.f32 %v1347_v20, %v907_v21 }
 0x1f6   :  { %912 = vst [vmem:[#allocation10] sm:$0xff] %v908_v22 }
 0x1fb   :  { %v909_v23 = vpop.f32.mrf.mxu1 }
 0x1fc   :  { %v910_v24 = vadd.f32 %v1347_v20, %v909_v23 }
 0x1fe   :  { %913 = vst [vmem:[#allocation10 + $0x8] sm:$0xff] %v910_v24 }
 0x1ff   :  { %926 = dma.vmem_to_hbm [thread:$0]  %s919_s26, 256, %s921_s4, [#allocation4], %s1484_s29, %s1484_s29, %s1485_s30  }
 0x200   :  { %1474 = dma.done.wait [#allocation4], 256  }
 0x201   :  { %1475 = vsyncadd [#allocation4], 4294967040 }
 0x202   :  { %931 = vsyncpa [#allocation3], 1 }
 0x203   :  { %932 = vsyncpa [#allocation6], 1 }
 0x204   :  { %933 = vsyncpa [#allocation9], 1 }
 0x205   :  { %934 = vsyncpa [#allocation4], 1 }

</bundles_post_ra>
